<compile_context>
chip_gen: v5e
topology: v5e:2x2
jax: 0.10.0
libtpu: 0.0.40
codegen_flags: <defaults>
</compile_context>

<pallas_src>
import functools

import jax
import jax.numpy as jnp
from jax.experimental import pallas as pl
from jax.experimental.pallas import tpu as pltpu

LANE = 128
SUBLANE = 8


# ------------------------------ Pallas kernel ------------------------------

def _two_layer_fc_kernel(x_ref, w1_ref, b1_ref, w2_ref, b2_ref, o_ref):
    # x_ref : (tm, D)     flattened input rows (one batch tile)
    # w1_ref: (D, H)      fc1 weight, pre-transposed (in, out)
    # b1_ref: (1, H)
    # w2_ref: (H, Mp)     fc2 weight, pre-transposed + zero-padded to Mp lanes
    # b2_ref: (1, Mp)
    # o_ref : (tm, Mp)
    h = jnp.dot(x_ref[...], w1_ref[...], preferred_element_type=jnp.float32)
    h = jnp.maximum(h + b1_ref[...], 0.0)          # ReLU, hidden stays in VMEM
    out = jnp.dot(h, w2_ref[...], preferred_element_type=jnp.float32)
    o_ref[...] = (out + b2_ref[...]).astype(o_ref.dtype)


def two_layer_fc(x, params, *, num_classes):
    """Fused forward: flatten -> fc1 -> relu -> fc2 (single pallas_call)."""
    w1_t, b1, w2_p, b2_p = params
    N = x.shape[0]
    x_flat = x.reshape(N, -1)                      # torch x.view(N, -1)
    D = x_flat.shape[1]
    H = w1_t.shape[1]
    Mp = w2_p.shape[1]                             # lane-padded num_classes

    # Pad batch rows to a sublane-aligned, tileable row count.
    n_pad = ((N + SUBLANE - 1) // SUBLANE) * SUBLANE
    tm = min(n_pad, 256)                           # row tile (multiple of 8)
    n_pad = ((n_pad + tm - 1) // tm) * tm
    if n_pad != N:
        x_flat = jnp.zeros((n_pad, D), x_flat.dtype).at[:N].set(x_flat)

    out_p = pl.pallas_call(
        _two_layer_fc_kernel,
        out_shape=jax.ShapeDtypeStruct((n_pad, Mp), x.dtype),
        grid_spec=pltpu.PrefetchScalarGridSpec(
            num_scalar_prefetch=0,
            grid=(n_pad // tm,),
            in_specs=[
                pl.BlockSpec((tm, D), lambda i: (i, 0)),
                pl.BlockSpec((D, H), lambda i: (0, 0)),
                pl.BlockSpec((1, H), lambda i: (0, 0)),
                pl.BlockSpec((H, Mp), lambda i: (0, 0)),
                pl.BlockSpec((1, Mp), lambda i: (0, 0)),
            ],
            out_specs=pl.BlockSpec((tm, Mp), lambda i: (i, 0)),
        ),
        compiler_params=pltpu.CompilerParams(
            dimension_semantics=("parallel",)),
    )(x_flat, w1_t, b1.reshape(1, H), w2_p, b2_p)

    return out_p[:N, :num_classes]                 # drop padded rows / lanes


# ----------------------------- init & reference -----------------------------

def init_params(key, input_size, hidden_size, num_classes):
    """Kaiming-normal weights (torch semantics), stored in kernel-friendly
    (in, out) layout with fc2 zero-padded to a full 128-lane tile."""
    k1, k2 = jax.random.split(key)
    std1 = (2.0 / input_size) ** 0.5
    std2 = (2.0 / hidden_size) ** 0.5
    # torch weight is (out, in); we keep the mathematically identical (in, out)
    w1_t = std1 * jax.random.normal(k1, (input_size, hidden_size), jnp.float32)
    w2_t = std2 * jax.random.normal(k2, (hidden_size, num_classes), jnp.float32)
    b1 = jnp.zeros((hidden_size,), jnp.float32)
    b2 = jnp.zeros((num_classes,), jnp.float32)

    # One-time host-side padding of fc2 columns to a full lane tile.
    m_pad = max(LANE, ((num_classes + LANE - 1) // LANE) * LANE)
    w2_p = jnp.zeros((hidden_size, m_pad), jnp.float32).at[:, :num_classes].set(w2_t)
    b2_p = jnp.zeros((1, m_pad), jnp.float32).at[0, :num_classes].set(b2)
    return (w1_t, b1, w2_p, b2_p)


def reference_forward(x, params, *, num_classes):
    w1_t, b1, w2_p, b2_p = params
    flat = x.reshape(x.shape[0], -1)
    h = jnp.maximum(jnp.dot(flat, w1_t, precision="highest") + b1, 0.0)
    out = jnp.dot(h, w2_p, precision="highest") + b2_p
    return out[:, :num_classes]


# ---------------------------------- main ------------------------------------

if __name__ == "__main__":
    N, C, spatial = 2, 4, 16
    input_size = C * spatial * spatial            # 1024 (lane-aligned)
    hidden_size = 128                             # lane-aligned hidden dim
    num_classes = 10

    key = jax.random.PRNGKey(0)
    kx, kp = jax.random.split(key)
    x = jax.random.normal(kx, (N, C, spatial, spatial), jnp.float32)
    params = init_params(kp, input_size, hidden_size, num_classes)

    fwd = jax.jit(functools.partial(two_layer_fc, num_classes=num_classes))
    scores = fwd(x, params)
    scores = jax.block_until_ready(scores)

    ref = reference_forward(x, params, num_classes=num_classes)
    assert scores.shape == (N, num_classes)
    assert jnp.allclose(scores, ref, rtol=1e-3, atol=1e-3), (
        f"max abs err {float(jnp.max(jnp.abs(scores - ref)))}")

    print("KERNEL_OK")
</pallas_src>

<mosaic_0001>
module attributes {stable_mosaic.version = 11 : i64} {
  func.func @_two_layer_fc_kernel(%arg0: i32, %arg1: memref<8x1024xf32, #tpu.memory_space<vmem>>, %arg2: memref<1024x128xf32, #tpu.memory_space<vmem>>, %arg3: memref<1x128xf32, #tpu.memory_space<vmem>>, %arg4: memref<128x128xf32, #tpu.memory_space<vmem>>, %arg5: memref<1x128xf32, #tpu.memory_space<vmem>>, %arg6: memref<8x128xf32, #tpu.memory_space<vmem>>) attributes {dimension_semantics = [#tpu.dimension_semantics<parallel>], iteration_bounds = array<i64: 1>, scalar_prefetch = 0 : i64, scratch_operands = 0 : i64, tpu.core_type = #tpu.core_type<tc>, window_params = [{transform_indices = @transform_0, window_bounds = array<i64: 8, 1024>}, {pipeline_mode = #tpu.pipeline_mode<synchronous>, transform_indices = @transform_1, window_bounds = array<i64: 1024, 128>}, {pipeline_mode = #tpu.pipeline_mode<synchronous>, transform_indices = @transform_2, window_bounds = array<i64: 1, 128>}, {pipeline_mode = #tpu.pipeline_mode<synchronous>, transform_indices = @transform_3, window_bounds = array<i64: 128, 128>}, {pipeline_mode = #tpu.pipeline_mode<synchronous>, transform_indices = @transform_4, window_bounds = array<i64: 1, 128>}, {transform_indices = @transform_5, window_bounds = array<i64: 8, 128>}]} {
    %c0 = arith.constant 0 : index
    %c0_0 = arith.constant 0 : index
    %0 = vector.load %arg1[%c0, %c0_0] : memref<8x1024xf32, #tpu.memory_space<vmem>>, vector<8x1024xf32>
    %c0_1 = arith.constant 0 : index
    %c0_2 = arith.constant 0 : index
    %1 = vector.load %arg2[%c0_1, %c0_2] : memref<1024x128xf32, #tpu.memory_space<vmem>>, vector<1024x128xf32>
    %cst = arith.constant dense<0.000000e+00> : vector<8x128xf32>
    %2 = tpu.matmul %0, %1, %cst {dimension_numbers = #tpu.dot_dimension_numbers<[1], [0], [0], [1], [0, 0, 1, 1], [], []>} : vector<8x1024xf32>, vector<1024x128xf32>, vector<8x128xf32> -> vector<8x128xf32>
    %c0_3 = arith.constant 0 : index
    %c0_4 = arith.constant 0 : index
    %3 = vector.load %arg3[%c0_3, %c0_4] : memref<1x128xf32, #tpu.memory_space<vmem>>, vector<1x128xf32>
    %4 = vector.broadcast %3 : vector<1x128xf32> to vector<8x128xf32>
    %5 = arith.addf %2, %4 : vector<8x128xf32>
    %cst_5 = arith.constant 0.000000e+00 : f32
    %6 = vector.broadcast %cst_5 : f32 to vector<8x128xf32>
    %7 = arith.maximumf %5, %6 : vector<8x128xf32>
    %c0_6 = arith.constant 0 : index
    %c0_7 = arith.constant 0 : index
    %8 = vector.load %arg4[%c0_6, %c0_7] : memref<128x128xf32, #tpu.memory_space<vmem>>, vector<128x128xf32>
    %cst_8 = arith.constant dense<0.000000e+00> : vector<8x128xf32>
    %9 = tpu.matmul %7, %8, %cst_8 {dimension_numbers = #tpu.dot_dimension_numbers<[1], [0], [0], [1], [0, 0, 1, 1], [], []>} : vector<8x128xf32>, vector<128x128xf32>, vector<8x128xf32> -> vector<8x128xf32>
    %c0_9 = arith.constant 0 : index
    %c0_10 = arith.constant 0 : index
    %10 = vector.load %arg5[%c0_9, %c0_10] : memref<1x128xf32, #tpu.memory_space<vmem>>, vector<1x128xf32>
    %11 = vector.broadcast %10 : vector<1x128xf32> to vector<8x128xf32>
    %12 = arith.addf %9, %11 : vector<8x128xf32>
    %c0_11 = arith.constant 0 : index
    %c0_12 = arith.constant 0 : index
    %13 = vector.load %arg6[%c0_11, %c0_12] : memref<8x128xf32, #tpu.memory_space<vmem>>, vector<8x128xf32>
    tpu.vector_store %arg6[%c0_11, %c0_12], %12 {strides = array<i32>} : memref<8x128xf32, #tpu.memory_space<vmem>>, vector<8x128xf32>,
    return
  }
  func.func @transform_0(%arg0: i32) -> (i32, i32) {
    %c0_i32 = arith.constant 0 : i32
    %c0_i32_0 = arith.constant 0 : i32
    return %arg0, %c0_i32 : i32, i32
  }
  func.func @transform_1(%arg0: i32) -> (i32, i32) {
    %c0_i32 = arith.constant 0 : i32
    %c0_i32_0 = arith.constant 0 : i32
    %c0_i32_1 = arith.constant 0 : i32
    return %c0_i32, %c0_i32_0 : i32, i32
  }
  func.func @transform_2(%arg0: i32) -> (i32, i32) {
    %c0_i32 = arith.constant 0 : i32
    %c0_i32_0 = arith.constant 0 : i32
    %c0_i32_1 = arith.constant 0 : i32
    return %c0_i32, %c0_i32_0 : i32, i32
  }
  func.func @transform_3(%arg0: i32) -> (i32, i32) {
    %c0_i32 = arith.constant 0 : i32
    %c0_i32_0 = arith.constant 0 : i32
    %c0_i32_1 = arith.constant 0 : i32
    return %c0_i32, %c0_i32_0 : i32, i32
  }
  func.func @transform_4(%arg0: i32) -> (i32, i32) {
    %c0_i32 = arith.constant 0 : i32
    %c0_i32_0 = arith.constant 0 : i32
    %c0_i32_1 = arith.constant 0 : i32
    return %c0_i32, %c0_i32_0 : i32, i32
  }
  func.func @transform_5(%arg0: i32) -> (i32, i32) {
    %c0_i32 = arith.constant 0 : i32
    %c0_i32_0 = arith.constant 0 : i32
    return %arg0, %c0_i32 : i32, i32
  }
}

</mosaic_0001>

<bundles_post_ra>
// kernel: two_layer_fc.1
= control target key start
LH: loop header
LB: loop body
LE: loop exit
PB: predicated region body
PF: predicated region fallthrough
CT: control target
= control target key end

     0   :  { %10 = vsyncpa [#allocation3], 0  ;;  %s414_s21 = smov [#allocation2]   ;;  %s415_s23 = smov 128   ;;  %s531_s0 = inlined_call_operand.vmem [shape: f32[8,1024], index: 0, kind: input, shape index: {}]   ;;  %s532_s1 = inlined_call_operand.hbm [shape: f32[1024,128], index: 1, kind: input, shape index: {}]   ;;  %s533_s2 = inlined_call_operand.vmem [shape: f32[1,128], index: 2, kind: input, shape index: {}]   ;;  %s534_s3 = inlined_call_operand.vmem [shape: f32[128,128], index: 3, kind: input, shape index: {}]   ;;  %s535_s4 = inlined_call_operand.vmem [shape: f32[1,128], index: 4, kind: input, shape index: {}]   ;;  %s536_s5 = inlined_call_operand.vmem [shape: f32[8,128], index: 5, kind: output, shape index: {}]  }
   0x1   :  { %s17_s20 = sshll.u32 %s532_s1, 4  ;;  %s19_s22 = sshll.u32 %s414_s21, 4  ;;  %s18_s20 = int_to_ptr.hbm [resolvable:$true] %s17_s20  ;;  %s20_s22 = int_to_ptr.vmem [resolvable:$true] %s19_s22 }
   0x2   :  { %s416_s24 = smov 8  }
   0x3   :  { %25 = dma.hbm_to_vmem [thread:$0]  %s18_s20, 16384, %s20_s22, [#allocation3], %s415_s23, %s415_s23, %s416_s24  }
   0x4   :  { %412 = dma.done.wait [#allocation3], 16384  }
   0x5   :  { %413 = vsyncadd [#allocation3], 4294950912  ;;  %v91_v0 = vld [vmem:[#allocation2 + $0x178] sm:$0xff]  ;;  %v90_v2 = vld [vmem:[#allocation2 + $0x170] sm:$0xff] }
   0x6   :  { %v59_v1 = vld [vmem:[#allocation2 + $0x78] sm:$0xff]  ;;  %216 = vmatpush.msra.mxu2 %v91_v0  ;;  %v58_v4 = vld [vmem:[#allocation2 + $0x70] sm:$0xff]  ;;  %v89_v6 = vld [vmem:[#allocation2 + $0x168] sm:$0xff] }
   0x7   :  { %176 = vmatpush.msra.mxu0 %v59_v1  ;;  %v107_v3 = vld [vmem:[#allocation2 + $0x1f8] sm:$0xff]  ;;  %v106_v7 = vld [vmem:[#allocation2 + $0x1f0] sm:$0xff]  ;;  %v57_v8 = vld [vmem:[#allocation2 + $0x68] sm:$0xff] }
   0x8   :  { %v75_v5 = vld [vmem:[#allocation2 + $0xf8] sm:$0xff]  ;;  %236 = vmatpush.msra.mxu3 %v107_v3  ;;  %217 = vmatpush.msra.mxu2 %v90_v2  ;;  %v74_v9 = vld [vmem:[#allocation2 + $0xf0] sm:$0xff]  ;;  %v105_v10 = vld [vmem:[#allocation2 + $0x1e8] sm:$0xff] }
   0x9   :  { %196 = vmatpush.msra.mxu1 %v75_v5  ;;  %177 = vmatpush.msra.mxu0 %v58_v4  ;;  %v88_v11 = vld [vmem:[#allocation2 + $0x160] sm:$0xff]  ;;  %v73_v13 = vld [vmem:[#allocation2 + $0xe8] sm:$0xff]  ;;  %v87_v16 = vld [vmem:[#allocation2 + $0x158] sm:$0xff] }
   0xa   :  { %237 = vmatpush.msra.mxu3 %v106_v7  ;;  %v56_v12 = vld [vmem:[#allocation2 + $0x60] sm:$0xff]  ;;  %218 = vmatpush.msra.mxu2 %v89_v6  ;;  %v55_v17 = vld [vmem:[#allocation2 + $0x58] sm:$0xff]  ;;  %v86_v20 = vld [vmem:[#allocation2 + $0x150] sm:$0xff] }
   0xb   :  { %197 = vmatpush.msra.mxu1 %v74_v9  ;;  %178 = vmatpush.msra.mxu0 %v57_v8  ;;  %v104_v14 = vld [vmem:[#allocation2 + $0x1e0] sm:$0xff]  ;;  %v103_v18 = vld [vmem:[#allocation2 + $0x1d8] sm:$0xff]  ;;  %v54_v21 = vld [vmem:[#allocation2 + $0x50] sm:$0xff] }
   0xc   :  { %v72_v15 = vld [vmem:[#allocation2 + $0xe0] sm:$0xff]  ;;  %238 = vmatpush.msra.mxu3 %v105_v10  ;;  %219 = vmatpush.msra.mxu2 %v88_v11  ;;  %v71_v19 = vld [vmem:[#allocation2 + $0xd8] sm:$0xff]  ;;  %v102_v22 = vld [vmem:[#allocation2 + $0x1d0] sm:$0xff] }
   0xd   :  { %198 = vmatpush.msra.mxu1 %v73_v13  ;;  %179 = vmatpush.msra.mxu0 %v56_v12  ;;  %v70_v23 = vld [vmem:[#allocation2 + $0xd0] sm:$0xff]  ;;  %v85_v24 = vld [vmem:[#allocation2 + $0x148] sm:$0xff]  ;;  %v84_v28 = vld [vmem:[#allocation2 + $0x140] sm:$0xff] }
   0xe   :  { %239 = vmatpush.msra.mxu3 %v104_v14  ;;  %220 = vmatpush.msra.mxu2 %v87_v16  ;;  %v53_v25 = vld [vmem:[#allocation2 + $0x48] sm:$0xff]  ;;  %v52_v29 = vld [vmem:[#allocation2 + $0x40] sm:$0xff]  ;;  %v83_v32 = vld [vmem:[#allocation2 + $0x138] sm:$0xff] }
   0xf   :  { %199 = vmatpush.msra.mxu1 %v72_v15  ;;  %180 = vmatpush.msra.mxu0 %v55_v17  ;;  %v101_v26 = vld [vmem:[#allocation2 + $0x1c8] sm:$0xff]  ;;  %v100_v30 = vld [vmem:[#allocation2 + $0x1c0] sm:$0xff]  ;;  %v51_v33 = vld [vmem:[#allocation2 + $0x38] sm:$0xff] }
  0x10   :  { %240 = vmatpush.msra.mxu3 %v103_v18  ;;  %221 = vmatpush.msra.mxu2 %v86_v20  ;;  %v69_v27 = vld [vmem:[#allocation2 + $0xc8] sm:$0xff]  ;;  %v68_v31 = vld [vmem:[#allocation2 + $0xc0] sm:$0xff]  ;;  %v99_v34 = vld [vmem:[#allocation2 + $0x1b8] sm:$0xff] }
  0x11   :  { %200 = vmatpush.msra.mxu1 %v71_v19  ;;  %181 = vmatpush.msra.mxu0 %v54_v21  ;;  %v67_v35 = vld [vmem:[#allocation2 + $0xb8] sm:$0xff]  ;;  %v82_v36 = vld [vmem:[#allocation2 + $0x130] sm:$0xff]  ;;  %v81_v40 = vld [vmem:[#allocation2 + $0x128] sm:$0xff] }
  0x12   :  { %241 = vmatpush.msra.mxu3 %v102_v22  ;;  %222 = vmatpush.msra.mxu2 %v85_v24  ;;  %v50_v37 = vld [vmem:[#allocation2 + $0x30] sm:$0xff]  ;;  %v49_v41 = vld [vmem:[#allocation2 + $0x28] sm:$0xff]  ;;  %v80_v44 = vld [vmem:[#allocation2 + $0x120] sm:$0xff] }
  0x13   :  { %201 = vmatpush.msra.mxu1 %v70_v23  ;;  %182 = vmatpush.msra.mxu0 %v53_v25  ;;  %v98_v38 = vld [vmem:[#allocation2 + $0x1b0] sm:$0xff]  ;;  %v97_v42 = vld [vmem:[#allocation2 + $0x1a8] sm:$0xff]  ;;  %v48_v45 = vld [vmem:[#allocation2 + $0x20] sm:$0xff] }
  0x14   :  { %242 = vmatpush.msra.mxu3 %v101_v26  ;;  %223 = vmatpush.msra.mxu2 %v84_v28  ;;  %v66_v39 = vld [vmem:[#allocation2 + $0xb0] sm:$0xff]  ;;  %v65_v43 = vld [vmem:[#allocation2 + $0xa8] sm:$0xff]  ;;  %v96_v46 = vld [vmem:[#allocation2 + $0x1a0] sm:$0xff] }
  0x15   :  { %202 = vmatpush.msra.mxu1 %v69_v27  ;;  %183 = vmatpush.msra.mxu0 %v52_v29  ;;  %v64_v47 = vld [vmem:[#allocation2 + $0xa0] sm:$0xff]  ;;  %v79_v48 = vld [vmem:[#allocation2 + $0x118] sm:$0xff]  ;;  %v78_v52 = vld [vmem:[#allocation2 + $0x110] sm:$0xff] }
  0x16   :  { %243 = vmatpush.msra.mxu3 %v100_v30  ;;  %224 = vmatpush.msra.mxu2 %v83_v32  ;;  %v47_v49 = vld [vmem:[#allocation2 + $0x18] sm:$0xff]  ;;  %v46_v53 = vld [vmem:[#allocation2 + $0x10] sm:$0xff]  ;;  %v77_v56 = vld [vmem:[#allocation2 + $0x108] sm:$0xff] }
  0x17   :  { %203 = vmatpush.msra.mxu1 %v68_v31  ;;  %184 = vmatpush.msra.mxu0 %v51_v33  ;;  %v95_v50 = vld [vmem:[#allocation2 + $0x198] sm:$0xff]  ;;  %v94_v54 = vld [vmem:[#allocation2 + $0x190] sm:$0xff]  ;;  %v45_v57 = vld [vmem:[#allocation2 + $0x8] sm:$0xff] }
  0x18   :  { %244 = vmatpush.msra.mxu3 %v99_v34  ;;  %225 = vmatpush.msra.mxu2 %v82_v36  ;;  %v63_v51 = vld [vmem:[#allocation2 + $0x98] sm:$0xff]  ;;  %v62_v55 = vld [vmem:[#allocation2 + $0x90] sm:$0xff]  ;;  %v93_v58 = vld [vmem:[#allocation2 + $0x188] sm:$0xff] }
  0x19   :  { %204 = vmatpush.msra.mxu1 %v67_v35  ;;  %185 = vmatpush.msra.mxu0 %v50_v37  ;;  %v61_v59 = vld [vmem:[#allocation2 + $0x88] sm:$0xff]  ;;  %v76_v60 = vld [vmem:[#allocation2 + $0x100] sm:$0xff]  ;;  %v155_v62 = vld [vmem:[#allocation2 + $0x378] sm:$0xff] }
  0x1a   :  { %245 = vmatpush.msra.mxu3 %v98_v38  ;;  %226 = vmatpush.msra.mxu2 %v81_v40  ;;  %v44_v61 = vld [vmem:[#allocation2] sm:$0xff]  ;;  %v123_v0 = vld [vmem:[#allocation2 + $0x278] sm:$0xff]  ;;  %v154_v2 = vld [vmem:[#allocation2 + $0x370] sm:$0xff] }
  0x1b   :  { %205 = vmatpush.msra.mxu1 %v66_v39  ;;  %186 = vmatpush.msra.mxu0 %v49_v41  ;;  %v92_v63 = vld [vmem:[#allocation2 + $0x180] sm:$0xff]  ;;  %v171_v1 = vld [vmem:[#allocation2 + $0x3f8] sm:$0xff]  ;;  %v122_v4 = vld [vmem:[#allocation2 + $0x270] sm:$0xff] }
  0x1c   :  { %246 = vmatpush.msra.mxu3 %v97_v42  ;;  %227 = vmatpush.msra.mxu2 %v80_v44  ;;  %v60_v3 = vld [vmem:[#allocation2 + $0x80] sm:$0xff]  ;;  %v139_v5 = vld [vmem:[#allocation2 + $0x2f8] sm:$0xff]  ;;  %v153_v6 = vld [vmem:[#allocation2 + $0x368] sm:$0xff] }
  0x1d   :  { %206 = vmatpush.msra.mxu1 %v65_v43  ;;  %187 = vmatpush.msra.mxu0 %v48_v45  ;;  %v170_v7 = vld [vmem:[#allocation2 + $0x3f0] sm:$0xff]  ;;  %v121_v8 = vld [vmem:[#allocation2 + $0x268] sm:$0xff]  ;;  %v152_v10 = vld [vmem:[#allocation2 + $0x360] sm:$0xff] }
  0x1e   :  { %247 = vmatpush.msra.mxu3 %v96_v46  ;;  %228 = vmatpush.msra.mxu2 %v79_v48  ;;  %v138_v9 = vld [vmem:[#allocation2 + $0x2f0] sm:$0xff]  ;;  %v169_v11 = vld [vmem:[#allocation2 + $0x3e8] sm:$0xff]  ;;  %v120_v12 = vld [vmem:[#allocation2 + $0x260] sm:$0xff] }
  0x1f   :  { %207 = vmatpush.msra.mxu1 %v64_v47  ;;  %188 = vmatpush.msra.mxu0 %v47_v49  ;;  %v137_v13 = vld [vmem:[#allocation2 + $0x2e8] sm:$0xff]  ;;  %v151_v14 = vld [vmem:[#allocation2 + $0x358] sm:$0xff]  ;;  %v168_v15 = vld [vmem:[#allocation2 + $0x3e0] sm:$0xff] }
  0x20   :  { %248 = vmatpush.msra.mxu3 %v95_v50  ;;  %229 = vmatpush.msra.mxu2 %v78_v52  ;;  %v119_v16 = vld [vmem:[#allocation2 + $0x258] sm:$0xff]  ;;  %v136_v17 = vld [vmem:[#allocation2 + $0x2e0] sm:$0xff]  ;;  %v150_v18 = vld [vmem:[#allocation2 + $0x350] sm:$0xff] }
  0x21   :  { %208 = vmatpush.msra.mxu1 %v63_v51  ;;  %189 = vmatpush.msra.mxu0 %v46_v53  ;;  %v167_v19 = vld [vmem:[#allocation2 + $0x3d8] sm:$0xff]  ;;  %v118_v20 = vld [vmem:[#allocation2 + $0x250] sm:$0xff]  ;;  %v149_v22 = vld [vmem:[#allocation2 + $0x348] sm:$0xff] }
  0x22   :  { %249 = vmatpush.msra.mxu3 %v94_v54  ;;  %230 = vmatpush.msra.mxu2 %v77_v56  ;;  %v135_v21 = vld [vmem:[#allocation2 + $0x2d8] sm:$0xff]  ;;  %v166_v23 = vld [vmem:[#allocation2 + $0x3d0] sm:$0xff]  ;;  %v117_v24 = vld [vmem:[#allocation2 + $0x248] sm:$0xff] }
  0x23   :  { %209 = vmatpush.msra.mxu1 %v62_v55  ;;  %190 = vmatpush.msra.mxu0 %v45_v57  ;;  %v134_v25 = vld [vmem:[#allocation2 + $0x2d0] sm:$0xff]  ;;  %v148_v26 = vld [vmem:[#allocation2 + $0x340] sm:$0xff]  ;;  %v165_v27 = vld [vmem:[#allocation2 + $0x3c8] sm:$0xff] }
  0x24   :  { %250 = vmatpush.msra.mxu3 %v93_v58  ;;  %231 = vmatpush.msra.mxu2 %v76_v60  ;;  %v116_v28 = vld [vmem:[#allocation2 + $0x240] sm:$0xff]  ;;  %v133_v29 = vld [vmem:[#allocation2 + $0x2c8] sm:$0xff]  ;;  %v147_v30 = vld [vmem:[#allocation2 + $0x338] sm:$0xff] }
  0x25   :  { %210 = vmatpush.msra.mxu1 %v61_v59  ;;  %191 = vmatpush.msra.mxu0 %v44_v61  ;;  %v164_v31 = vld [vmem:[#allocation2 + $0x3c0] sm:$0xff]  ;;  %v115_v32 = vld [vmem:[#allocation2 + $0x238] sm:$0xff]  ;;  %v146_v34 = vld [vmem:[#allocation2 + $0x330] sm:$0xff] }
  0x26   :  { %296 = vmatpush.msrb.mxu2 %v155_v62  ;;  %251 = vmatpush.msra.mxu3 %v92_v63  ;;  %v132_v33 = vld [vmem:[#allocation2 + $0x2c0] sm:$0xff]  ;;  %v163_v35 = vld [vmem:[#allocation2 + $0x3b8] sm:$0xff]  ;;  %v114_v36 = vld [vmem:[#allocation2 + $0x230] sm:$0xff] }
  0x27   :  { %256 = vmatpush.msrb.mxu0 %v123_v0  ;;  %211 = vmatpush.msra.mxu1 %v60_v3  ;;  %v131_v37 = vld [vmem:[#allocation2 + $0x2b8] sm:$0xff]  ;;  %v145_v38 = vld [vmem:[#allocation2 + $0x328] sm:$0xff]  ;;  %v162_v39 = vld [vmem:[#allocation2 + $0x3b0] sm:$0xff] }
  0x28   :  { %316 = vmatpush.msrb.mxu3 %v171_v1  ;;  %297 = vmatpush.msrb.mxu2 %v154_v2  ;;  %v113_v40 = vld [vmem:[#allocation2 + $0x228] sm:$0xff]  ;;  %v130_v41 = vld [vmem:[#allocation2 + $0x2b0] sm:$0xff]  ;;  %v144_v42 = vld [vmem:[#allocation2 + $0x320] sm:$0xff] }
  0x29   :  { %257 = vmatpush.msrb.mxu0 %v122_v4  ;;  %276 = vmatpush.msrb.mxu1 %v139_v5  ;;  %v161_v43 = vld [vmem:[#allocation2 + $0x3a8] sm:$0xff]  ;;  %v38_v44 = vld [vmem:[%s531_s0 + $0x10] sm:$0xff]  ;;  %v112_v45 = vld [vmem:[#allocation2 + $0x220] sm:$0xff] }
  0x2a   :  { %298 = vmatpush.msrb.mxu2 %v153_v6  ;;  %317 = vmatpush.msrb.mxu3 %v170_v7  ;;  %v129_v46 = vld [vmem:[#allocation2 + $0x2a8] sm:$0xff]  ;;  %v143_v47 = vld [vmem:[#allocation2 + $0x318] sm:$0xff]  ;;  %v160_v48 = vld [vmem:[#allocation2 + $0x3a0] sm:$0xff] }
  0x2b   :  { %258 = vmatpush.msrb.mxu0 %v121_v8  ;;  %277 = vmatpush.msrb.mxu1 %v138_v9  ;;  %v36_v49 = vld [vmem:[%s531_s0] sm:$0xff]  ;;  %v39_v50 = vld [vmem:[%s531_s0 + $0x18] sm:$0xff]  ;;  %v142_v53 = vld [vmem:[#allocation2 + $0x310] sm:$0xff] }
  0x2c   :  { %299 = vmatpush.msrb.mxu2 %v152_v10  ;;  %318 = vmatpush.msrb.mxu3 %v169_v11  ;;  %v111_v51 = vld [vmem:[#allocation2 + $0x218] sm:$0xff]  ;;  %v128_v52 = vld [vmem:[#allocation2 + $0x2a0] sm:$0xff]  ;;  %v37_v55 = vld [vmem:[%s531_s0 + $0x8] sm:$0xff] }
  0x2d   :  { %259 = vmatpush.msrb.mxu0 %v120_v12  ;;  %278 = vmatpush.msrb.mxu1 %v137_v13  ;;  %v159_v54 = vld [vmem:[#allocation2 + $0x398] sm:$0xff]  ;;  %v110_v56 = vld [vmem:[#allocation2 + $0x210] sm:$0xff]  ;;  %v141_v58 = vld [vmem:[#allocation2 + $0x308] sm:$0xff] }
  0x2e   :  { %300 = vmatpush.msrb.mxu2 %v151_v14  ;;  %319 = vmatpush.msrb.mxu3 %v168_v15  ;;  %v127_v57 = vld [vmem:[#allocation2 + $0x298] sm:$0xff]  ;;  %v158_v59 = vld [vmem:[#allocation2 + $0x390] sm:$0xff]  ;;  %v109_v60 = vld [vmem:[#allocation2 + $0x208] sm:$0xff] }
  0x2f   :  { %260 = vmatpush.msrb.mxu0 %v119_v16  ;;  %279 = vmatpush.msrb.mxu1 %v136_v17  ;;  %v126_v61 = vld [vmem:[#allocation2 + $0x290] sm:$0xff]  ;;  %v140_v62 = vld [vmem:[#allocation2 + $0x300] sm:$0xff]  ;;  %v157_v63 = vld [vmem:[#allocation2 + $0x388] sm:$0xff] }
  0x30   :  { %301 = vmatpush.msrb.mxu2 %v150_v18  ;;  %320 = vmatpush.msrb.mxu3 %v167_v19  ;;  %v42_v0 = vld [vmem:[%s531_s0 + $0x30] sm:$0xff]  ;;  %v108_v1 = vld [vmem:[#allocation2 + $0x200] sm:$0xff]  ;;  %v125_v2 = vld [vmem:[#allocation2 + $0x288] sm:$0xff] }
  0x31   :  { %261 = vmatpush.msrb.mxu0 %v118_v20  ;;  %280 = vmatpush.msrb.mxu1 %v135_v21  ;;  %v156_v3 = vld [vmem:[#allocation2 + $0x380] sm:$0xff]  ;;  %v43_v5 = vld [vmem:[%s531_s0 + $0x38] sm:$0xff]  ;;  %v41_v8 = vld [vmem:[%s531_s0 + $0x28] sm:$0xff] }
  0x32   :  { %302 = vmatpush.msrb.mxu2 %v149_v22  ;;  %321 = vmatpush.msrb.mxu3 %v166_v23  ;;  %v40_v4 = vld [vmem:[%s531_s0 + $0x20] sm:$0xff]  ;;  %v352_v7 = vld [vmem:[%s534_s3 + $0x78] sm:$0xff]  ;;  %v351_v9 = vld [vmem:[%s534_s3 + $0x70] sm:$0xff] }
  0x33   :  { %262 = vmatpush.msrb.mxu0 %v117_v24  ;;  %281 = vmatpush.msrb.mxu1 %v134_v25  ;;  %v124_v6 = vld [vmem:[#allocation2 + $0x280] sm:$0xff]  ;;  %v350_v10 = vld [vmem:[%s534_s3 + $0x68] sm:$0xff]  ;;  %v348_v12 = vld [vmem:[%s534_s3 + $0x58] sm:$0xff] }
  0x34   :  { %303 = vmatpush.msrb.mxu2 %v148_v26  ;;  %322 = vmatpush.msrb.mxu3 %v165_v27  ;;  %v349_v11 = vld [vmem:[%s534_s3 + $0x60] sm:$0xff]  ;;  %v347_v13 = vld [vmem:[%s534_s3 + $0x50] sm:$0xff]  ;;  %v346_v14 = vld [vmem:[%s534_s3 + $0x48] sm:$0xff] }
  0x35   :  { %263 = vmatpush.msrb.mxu0 %v116_v28  ;;  %282 = vmatpush.msrb.mxu1 %v133_v29  ;;  %v345_v15 = vld [vmem:[%s534_s3 + $0x40] sm:$0xff]  ;;  %v344_v16 = vld [vmem:[%s534_s3 + $0x38] sm:$0xff]  ;;  %v343_v17 = vld [vmem:[%s534_s3 + $0x30] sm:$0xff] }
  0x36   :  { %304 = vmatpush.msrb.mxu2 %v147_v30  ;;  %323 = vmatpush.msrb.mxu3 %v164_v31  ;;  %v342_v18 = vld [vmem:[%s534_s3 + $0x28] sm:$0xff]  ;;  %v341_v19 = vld [vmem:[%s534_s3 + $0x20] sm:$0xff]  ;;  %v340_v20 = vld [vmem:[%s534_s3 + $0x18] sm:$0xff] }
  0x37   :  { %264 = vmatpush.msrb.mxu0 %v115_v32  ;;  %283 = vmatpush.msrb.mxu1 %v132_v33  ;;  %v339_v21 = vld [vmem:[%s534_s3 + $0x10] sm:$0xff]  ;;  %v338_v22 = vld [vmem:[%s534_s3 + $0x8] sm:$0xff]  ;;  %v337_v23 = vld [vmem:[%s534_s3] sm:$0xff] }
  0x38   :  { %305 = vmatpush.msrb.mxu2 %v146_v34  ;;  %324 = vmatpush.msrb.mxu3 %v163_v35  ;;  %v386_v24 = vld [vmem:[%s533_s2] ss:$0 sm:$0xff] }
  0x39   :  { %265 = vmatpush.msrb.mxu0 %v114_v36  ;;  %284 = vmatpush.msrb.mxu1 %v131_v37 }
  0x3a   :  { %306 = vmatpush.msrb.mxu2 %v145_v38  ;;  %325 = vmatpush.msrb.mxu3 %v162_v39 }
  0x3b   :  { %266 = vmatpush.msrb.mxu0 %v113_v40  ;;  %285 = vmatpush.msrb.mxu1 %v130_v41 }
  0x3c   :  { %307 = vmatpush.msrb.mxu2 %v144_v42  ;;  %326 = vmatpush.msrb.mxu3 %v161_v43  ;;  %v387_v42 = vld [vmem:[%s535_s4] ss:$0 sm:$0xff] }
  0x3d   :  { %232 = vmatmul.f32.vlgmr.msra.gmra.mxu2 %v38_v44  ;;  %267 = vmatpush.msrb.mxu0 %v112_v45 }
  0x3e   :  { %286 = vmatpush.msrb.mxu1 %v129_v46  ;;  %308 = vmatpush.msrb.mxu2 %v143_v47 }
  0x3f   :  { %327 = vmatpush.msrb.mxu3 %v160_v48  ;;  %192 = vmatmul.f32.vlgmr.msra.gmra.mxu0 %v36_v49 }
  0x40   :  { %252 = vmatmul.f32.vlgmr.msra.gmra.mxu3 %v39_v50  ;;  %268 = vmatpush.msrb.mxu0 %v111_v51 }
  0x41   :  { %287 = vmatpush.msrb.mxu1 %v128_v52  ;;  %309 = vmatpush.msrb.mxu2 %v142_v53 }
  0x42   :  { %328 = vmatpush.msrb.mxu3 %v159_v54  ;;  %212 = vmatmul.f32.vlgmr.msra.gmra.mxu1 %v37_v55 }
  0x43   :  { %269 = vmatpush.msrb.mxu0 %v110_v56  ;;  %288 = vmatpush.msrb.mxu1 %v127_v57 }
  0x44   :  { %310 = vmatpush.msrb.mxu2 %v141_v58  ;;  %329 = vmatpush.msrb.mxu3 %v158_v59 }
  0x45   :  { %270 = vmatpush.msrb.mxu0 %v109_v60  ;;  %289 = vmatpush.msrb.mxu1 %v126_v61 }
  0x46   :  { %311 = vmatpush.msrb.mxu2 %v140_v62  ;;  %330 = vmatpush.msrb.mxu3 %v157_v63 }
  0x47   :  { %312 = vmatmul.f32.vlgmr.msrb.gmra.mxu2 %v42_v0  ;;  %271 = vmatpush.msrb.mxu0 %v108_v1 }
  0x48   :  { %290 = vmatpush.msrb.mxu1 %v125_v2  ;;  %331 = vmatpush.msrb.mxu3 %v156_v3 }
  0x49   :  { %272 = vmatmul.f32.vlgmr.msrb.gmra.mxu0 %v40_v4  ;;  %332 = vmatmul.f32.vlgmr.msrb.gmra.mxu3 %v43_v5 }
  0x4a   :  { %291 = vmatpush.msrb.mxu1 %v124_v6  ;;  %357 = vmatpush.msra.mxu0 %v352_v7 }
  0x4b   :  { %292 = vmatmul.f32.vlgmr.msrb.gmra.mxu1 %v41_v8 }
  0x4c   :  { %358 = vmatpush.msra.mxu0 %v351_v9 }
  0x4e   :  { %359 = vmatpush.msra.mxu0 %v350_v10 }
  0x50   :  { %360 = vmatpush.msra.mxu0 %v349_v11 }
  0x52   :  { %361 = vmatpush.msra.mxu0 %v348_v12 }
  0x54   :  { %362 = vmatpush.msra.mxu0 %v347_v13 }
  0x56   :  { %363 = vmatpush.msra.mxu0 %v346_v14 }
  0x58   :  { %364 = vmatpush.msra.mxu0 %v345_v15 }
  0x5a   :  { %365 = vmatpush.msra.mxu0 %v344_v16 }
  0x5c   :  { %366 = vmatpush.msra.mxu0 %v343_v17 }
  0x5e   :  { %367 = vmatpush.msra.mxu0 %v342_v18 }
  0x60   :  { %368 = vmatpush.msra.mxu0 %v341_v19 }
  0x62   :  { %369 = vmatpush.msra.mxu0 %v340_v20 }
  0x64   :  { %370 = vmatpush.msra.mxu0 %v339_v21 }
  0x66   :  { %371 = vmatpush.msra.mxu0 %v338_v22 }
  0x68   :  { %372 = vmatpush.msra.mxu0 %v337_v23 }
  0xbc   :  { %v193_v25 = vpop.f32.mrf.mxu0 }
  0xbd   :  { %v194_v26 = vadd.f32 %v386_v24, %v193_v25 }
  0xbf   :  { %v213_v27 = vpop.f32.mrf.mxu1 }
  0xc0   :  { %v214_v28 = vadd.f32 %v213_v27, %v194_v26  ;;  %v233_v29 = vpop.f32.mrf.mxu2 }
  0xc2   :  { %v234_v30 = vadd.f32 %v233_v29, %v214_v28 }
  0xc3   :  { %v253_v31 = vpop.f32.mrf.mxu3 }
  0xc4   :  { %v254_v32 = vadd.f32 %v253_v31, %v234_v30 }
  0xc6   :  { %v273_v33 = vpop.f32.mrf.mxu0 }
  0xc7   :  { %v274_v34 = vadd.f32 %v273_v33, %v254_v32 }
  0xc8   :  { %v293_v35 = vpop.f32.mrf.mxu1 }
  0xc9   :  { %v294_v36 = vadd.f32 %v293_v35, %v274_v34 }
  0xca   :  { %v313_v37 = vpop.f32.mrf.mxu2 }
  0xcb   :  { %v314_v38 = vadd.f32 %v313_v37, %v294_v36 }
  0xcc   :  { %v333_v39 = vpop.f32.mrf.mxu3 }
  0xcd   :  { %v334_v40 = vadd.f32 %v333_v39, %v314_v38 }
  0xcf   :  { %v336_v41 = vmax.f32 %v334_v40, 0.0 }
  0xd1   :  { %373 = vmatmul.f32.vlgmr.msra.gmra.mxu0 %v336_v41 }
 0x14e   :  { %v374_v43 = vpop.f32.mrf.mxu0 }
 0x14f   :  { %v375_v44 = vadd.f32 %v387_v42, %v374_v43 }
 0x151   :  { %377 = vst [vmem:[%s536_s5] sm:$0xff] %v375_v44 }
 0x152   :  { %382 = vsyncpa [#allocation3], 1 }

</bundles_post_ra>
